<compile_context>
chip_gen: v7x
topology: tpu7x:2x2x1
jax: 0.10.0
libtpu: 0.0.40
codegen_flags: <defaults>
</compile_context>

<pallas_src>
import jax
import jax.numpy as jnp
from jax.experimental import pallas as pl
from jax.experimental.pallas import tpu as pltpu

TILE = 128                      # node tile: lane-dense (…, 128) blocks
F32 = jnp.float32
BF16 = jnp.bfloat16
_BF16_WEIGHTS = ("w_emb", "w_a", "w_x", "w_dec", "w1i", "w1j")


def _cast_params(p):
    """bf16 matmul weights (f32 accumulate in-kernel), f32 biases / w2."""
    out = {}
    for k, v in p.items():
        if k == "pos_embedding":
            continue
        out[k] = v.astype(BF16) if k in _BF16_WEIGHTS else v.astype(F32)
    return out


# ----------------------------------------------------------------------------
# Kernel 1: row-tiled encoder (embedding -> graph mixing -> enc_to_dec -> ai/ajb)
# ----------------------------------------------------------------------------
def encoder_kernel(x_full_ref, x_row_ref, am_ref,
                   w_emb_ref, b_emb_ref, w_a_ref, w_x_ref, b_t_ref,
                   w_dec_ref, b_dec_ref, w1i_ref, w1j_ref, b1_ref,
                   ai_ref, ajb_ref):
    x_full = x_full_ref[0]                        # (N, C)  bf16
    x_row = x_row_ref[0]                          # (TN, C) bf16
    am = am_ref[0]                                # (TN, N) bf16 (0/1 exact)

    # to_node_embedding.  The full copy is needed for message passing; it is
    # recomputed per row tile (O(N*C*E) flops, negligible vs the N^2 matmul).
    emb_full = (jnp.dot(x_full, w_emb_ref[...], preferred_element_type=F32)
                + b_emb_ref[...]).astype(BF16)     # (N, E), single bf16 cast
    emb_row = (jnp.dot(x_row, w_emb_ref[...], preferred_element_type=F32)
               + b_emb_ref[...]).astype(BF16)      # (TN, E)

    # synthetic graph-transformer block: adjacency message passing + Linear.
    msg = jnp.dot(am, emb_full, preferred_element_type=F32)        # (TN, E)
    enc = jnp.maximum(
        jnp.dot(msg.astype(BF16), w_a_ref[...], preferred_element_type=F32)
        + jnp.dot(emb_row, w_x_ref[...], preferred_element_type=F32)
        + b_t_ref[...], 0.0)

    # enc_to_dec fused with the first edge-decoder Linear split into i/j halves
    # so the (N, N, 2D) concat never exists.
    dec = (jnp.dot(enc.astype(BF16), w_dec_ref[...],
                   preferred_element_type=F32) + b_dec_ref[...]).astype(BF16)
    ai_ref[0] = jnp.dot(dec, w1i_ref[...], preferred_element_type=F32)
    ajb_ref[0] = (jnp.dot(dec, w1j_ref[...], preferred_element_type=F32)
                  + b1_ref[...])                   # b1 hoisted out of N^2 loop


def run_encoder(x_nodes, a_masked, pc):
    B, Np, C = x_nodes.shape
    E = pc["w_emb"].shape[1]
    D = pc["w_dec"].shape[1]
    TN = TILE
    const = lambda b, r: (0, 0)
    return pl.pallas_call(
        encoder_kernel,
        out_shape=(jax.ShapeDtypeStruct((B, Np, D), F32),
                   jax.ShapeDtypeStruct((B, Np, D), F32)),
        grid=(B, Np // TN),
        in_specs=[
            pl.BlockSpec((1, Np, C), lambda b, r: (b, 0, 0)),   # x (all rows)
            pl.BlockSpec((1, TN, C), lambda b, r: (b, r, 0)),   # x (row tile)
            pl.BlockSpec((1, TN, Np), lambda b, r: (b, r, 0)),  # adjacency rows
            pl.BlockSpec((C, E), const),
            pl.BlockSpec((1, E), const),
            pl.BlockSpec((E, E), const),
            pl.BlockSpec((E, E), const),
            pl.BlockSpec((1, E), const),
            pl.BlockSpec((E, D), const),
            pl.BlockSpec((1, D), const),
            pl.BlockSpec((D, D), const),
            pl.BlockSpec((D, D), const),
            pl.BlockSpec((1, D), const),
        ],
        out_specs=(pl.BlockSpec((1, TN, D), lambda b, r: (b, r, 0)),
                   pl.BlockSpec((1, TN, D), lambda b, r: (b, r, 0))),
        compiler_params=pltpu.CompilerParams(
            dimension_semantics=("parallel", "parallel")),
    )(x_nodes, x_nodes, a_masked,
      pc["w_emb"], pc["b_emb"], pc["w_a"], pc["w_x"], pc["b_t"],
      pc["w_dec"], pc["b_dec"], pc["w1i"], pc["w1j"], pc["b1"])


# ----------------------------------------------------------------------------
# Kernel 2: (i, j)-tiled pairwise edge decoder + per-batch masked SSE
# ----------------------------------------------------------------------------
def edge_kernel(ai_ref, ajb_ref, a_ref, mask_ref, w2_ref, b2_ref,
                pred_ref, sse_ref):
    ti = pl.program_id(1)
    tj = pl.program_id(2)

    ai = ai_ref[0]                                 # (TI, D) f32
    ajb = ajb_ref[0]                               # (TJ, D) f32 (b1 included)
    # h[p, q, :] = relu(W1i^T dec_i + W1j^T dec_j + b1)
    h = jnp.maximum(ai[:, None, :] + ajb[None, :, :], 0.0)     # (TI, TJ, D)
    # second edge-decoder Linear (D -> 1): weighted lane reduce (D is small).
    pred = jnp.sum(h * w2_ref[...], axis=-1) + b2_ref[0, 0]    # (TI, TJ)
    pred_ref[0] = pred

    # per-batch SSE partial: its output block index is b, so the batch grid
    # axis stays "parallel" (no shared-scalar race) and only i/j revisit it.
    @pl.when((ti == 0) & (tj == 0))
    def _():
        sse_ref[...] = jnp.zeros_like(sse_ref)

    diff = pred - a_ref[0]
    sse_ref[...] = sse_ref[...] + jnp.sum(mask_ref[0] * diff * diff)


def run_edge_decoder(ai, ajb, a_f, mask_f, pc):
    B, Np, D = ai.shape
    TI = TJ = TILE
    const2 = lambda b, i, j: (0, 0)
    return pl.pallas_call(
        edge_kernel,
        out_shape=(jax.ShapeDtypeStruct((B, Np, Np), F32),
                   jax.ShapeDtypeStruct((B, 1, 1), F32)),
        grid=(B, Np // TI, Np // TJ),
        in_specs=[
            pl.BlockSpec((1, TI, D), lambda b, i, j: (b, i, 0)),
            pl.BlockSpec((1, TJ, D), lambda b, i, j: (b, j, 0)),
            pl.BlockSpec((1, TI, TJ), lambda b, i, j: (b, i, j)),
            pl.BlockSpec((1, TI, TJ), lambda b, i, j: (b, i, j)),
            pl.BlockSpec((1, D), const2),
            pl.BlockSpec(memory_space=pltpu.MemorySpace.SMEM),   # b2 scalar
        ],
        out_specs=(pl.BlockSpec((1, TI, TJ), lambda b, i, j: (b, i, j)),
                   pl.BlockSpec((1, 1, 1), lambda b, i, j: (b, 0, 0))),
        compiler_params=pltpu.CompilerParams(
            dimension_semantics=("parallel", "arbitrary", "arbitrary")),
    )(ai, ajb, a_f, mask_f, pc["w2"], pc["b2"])


# ----------------------------------------------------------------------------
# Module wrapper (glue in plain JAX)
# ----------------------------------------------------------------------------
def temporal_edge_mae_forward(x, a, params, mask_key, edge_masking_ratio=0.5):
    B, C, T, V = x.shape
    N = T * V
    x_nodes = jnp.transpose(x, (0, 2, 3, 1)).reshape(B, N, C)

    # _generate_edge_mask: exactly k random hidden edges per batch element
    # (torch.randperm semantics; RNG stream necessarily differs from torch).
    k = int(edge_masking_ratio * N * N)
    keys = jax.random.split(mask_key, B)

    def make_mask(key):
        sel = jax.random.permutation(key, N * N)[:k]
        return jnp.zeros((N * N,), jnp.bool_).at[sel].set(True).reshape(N, N)

    edge_mask = jax.vmap(make_mask)(keys)                  # (B, N, N) bool
    a_masked = jnp.where(edge_mask, 0.0, a)

    # pad the node dim to a multiple of TILE -> lane-dense (…,128) blocks;
    # padded rows/cols are zero-masked so they never touch the loss.
    Np = ((N + TILE - 1) // TILE) * TILE
    pad = Np - N
    xp = jnp.pad(x_nodes, ((0, 0), (0, pad), (0, 0))).astype(BF16)
    amp = jnp.pad(a_masked, ((0, 0), (0, pad), (0, pad))).astype(BF16)
    ap = jnp.pad(a.astype(F32), ((0, 0), (0, pad), (0, pad)))
    mp = jnp.pad(edge_mask.astype(F32), ((0, 0), (0, pad), (0, pad)))

    pc = _cast_params(params)
    ai, ajb = run_encoder(xp, amp, pc)                     # (B, Np, D) x2
    pred_pad, sse = run_edge_decoder(ai, ajb, ap, mp, pc)
    edge_pred = pred_pad[:, :N, :N]
    # mean over masked entries; sum(mask) == B*k because exactly k edges are
    # hidden per batch element (matches F.mse_loss on the masked subset).
    loss = jnp.sum(sse) / jnp.float32(B * k)
    return edge_pred, loss, edge_mask, a_masked


# ----------------------------------------------------------------------------
# Pure-JAX reference (same bf16-in / f32-accumulate scheme, for correctness)
# ----------------------------------------------------------------------------
def reference_forward(x, a, edge_mask, a_masked, params):
    pc = _cast_params(params)
    B, C, T, V = x.shape
    N = T * V

    def dot(p, q):   # bf16 operands, f32 MXU accumulate — same as the kernels
        return jnp.einsum("...ij,jk->...ik", p.astype(BF16), q,
                          preferred_element_type=F32)

    xn = jnp.transpose(x, (0, 2, 3, 1)).reshape(B, N, C)
    emb = dot(xn, pc["w_emb"]) + pc["b_emb"]
    msg = jnp.einsum("bij,bjd->bid", a_masked.astype(BF16), emb.astype(BF16),
                     preferred_element_type=F32)
    enc = jax.nn.relu(dot(msg, pc["w_a"]) + dot(emb, pc["w_x"]) + pc["b_t"])
    dec = dot(enc, pc["w_dec"]) + pc["b_dec"]
    ai = dot(dec, pc["w1i"])
    ajb = dot(dec, pc["w1j"]) + pc["b1"]
    h = jax.nn.relu(ai[:, :, None, :] + ajb[:, None, :, :])
    pred = jnp.sum(h * pc["w2"][0], axis=-1) + pc["b2"][0, 0]   # exact f32
    m = edge_mask.astype(F32)
    loss = jnp.sum(m * (pred - a.astype(F32)) ** 2) / jnp.sum(m)
    return pred, loss


# ----------------------------------------------------------------------------
def make_params(key, C, N, E, D):
    ks = jax.random.split(key, 10)
    s = 0.1
    return {
        # encoder.to_node_embedding (Linear C->E)
        "w_emb": s * jax.random.normal(ks[0], (C, E), F32),
        "b_emb": s * jax.random.normal(ks[1], (1, E), F32),
        # encoder.pos_embedding (fixes enc_dim; unused in forward)
        "pos_embedding": s * jax.random.normal(ks[2], (1, N, E), F32),
        # encoder.transformer (synthetic single graph-mixing layer)
        "w_a": s * jax.random.normal(ks[3], (E, E), F32),
        "w_x": s * jax.random.normal(ks[4], (E, E), F32),
        "b_t": s * jax.random.normal(ks[5], (1, E), F32),
        # enc_to_dec (Linear E->D, since E != D)
        "w_dec": s * jax.random.normal(ks[6], (E, D), F32),
        "b_dec": s * jax.random.normal(ks[7], (1, D), F32),
        # edge_decoder: Linear(2D->D) split into i/j halves, ReLU, Linear(D->1)
        "w1i": s * jax.random.normal(ks[8], (D, D), F32),
        "w1j": s * jax.random.normal(ks[9], (D, D), F32),
        "b1": jnp.full((1, D), 0.01, F32),
        "w2": s * jax.random.normal(jax.random.PRNGKey(123), (1, D), F32),
        "b2": jnp.full((1, 1), 0.02, F32),
    }


if __name__ == "__main__":
    B, C, T, V = 2, 4, 8, 16
    N = T * V                 # 128 -> exactly one lane-dense (128, 128) tile
    E, D = 32, 64             # enc_dim != decoder_dim -> enc_to_dec is a Linear

    root = jax.random.PRNGKey(0)
    k_x, k_p, k_mask = jax.random.split(root, 3)

    x = jax.random.normal(k_x, (B, C, T, V), F32)

    # Temporal adjacency: identity rule (t, v) -> (t+1, v).
    # TODO(synk): _TEMPORAL_RULES is not defined in the source module.
    idx = jnp.arange((T - 1) * V)
    a0 = jnp.zeros((N, N), F32).at[idx, idx + V].set(1.0)
    a = jnp.broadcast_to(a0, (B, N, N)).astype(F32)

    params = make_params(k_p, C, N, E, D)

    edge_pred, loss, edge_mask, a_masked = temporal_edge_mae_forward(
        x, a, params, k_mask, edge_masking_ratio=0.5)
    jax.block_until_ready((edge_pred, loss))

    ref_pred, ref_loss = reference_forward(x, a, edge_mask, a_masked, params)

    assert edge_pred.shape == (B, N, N)
    assert jnp.allclose(edge_pred, ref_pred, rtol=1e-3, atol=1e-3), \
        "edge_pred mismatch"
    assert jnp.allclose(loss, ref_loss, rtol=1e-3, atol=1e-3), "loss mismatch"

    print("KERNEL_OK")
</pallas_src>

<mosaic_0001>
module attributes {stable_mosaic.version = 11 : i64} {
  func.func @encoder_kernel(%arg0: i32, %arg1: i32, %arg2: memref<1x128x4xbf16, #tpu.memory_space<vmem>>, %arg3: memref<1x128x4xbf16, #tpu.memory_space<vmem>>, %arg4: memref<1x128x128xbf16, #tpu.memory_space<vmem>>, %arg5: memref<4x32xbf16, #tpu.memory_space<vmem>>, %arg6: memref<1x32xf32, #tpu.memory_space<vmem>>, %arg7: memref<32x32xbf16, #tpu.memory_space<vmem>>, %arg8: memref<32x32xbf16, #tpu.memory_space<vmem>>, %arg9: memref<1x32xf32, #tpu.memory_space<vmem>>, %arg10: memref<32x64xbf16, #tpu.memory_space<vmem>>, %arg11: memref<1x64xf32, #tpu.memory_space<vmem>>, %arg12: memref<64x64xbf16, #tpu.memory_space<vmem>>, %arg13: memref<64x64xbf16, #tpu.memory_space<vmem>>, %arg14: memref<1x64xf32, #tpu.memory_space<vmem>>, %arg15: memref<1x128x64xf32, #tpu.memory_space<vmem>>, %arg16: memref<1x128x64xf32, #tpu.memory_space<vmem>>) attributes {dimension_semantics = [#tpu.dimension_semantics<parallel>, #tpu.dimension_semantics<parallel>], iteration_bounds = array<i64: 2, 1>, scalar_prefetch = 0 : i64, scratch_operands = 0 : i64, tpu.core_type = #tpu.core_type<tc>, window_params = [{transform_indices = @transform_0, window_bounds = array<i64: 1, 128, 4>}, {transform_indices = @transform_1, window_bounds = array<i64: 1, 128, 4>}, {transform_indices = @transform_2, window_bounds = array<i64: 1, 128, 128>}, {pipeline_mode = #tpu.pipeline_mode<synchronous>, transform_indices = @transform_3, window_bounds = array<i64: 4, 32>}, {pipeline_mode = #tpu.pipeline_mode<synchronous>, transform_indices = @transform_4, window_bounds = array<i64: 1, 32>}, {pipeline_mode = #tpu.pipeline_mode<synchronous>, transform_indices = @transform_5, window_bounds = array<i64: 32, 32>}, {pipeline_mode = #tpu.pipeline_mode<synchronous>, transform_indices = @transform_6, window_bounds = array<i64: 32, 32>}, {pipeline_mode = #tpu.pipeline_mode<synchronous>, transform_indices = @transform_7, window_bounds = array<i64: 1, 32>}, {pipeline_mode = #tpu.pipeline_mode<synchronous>, transform_indices = @transform_8, window_bounds = array<i64: 32, 64>}, {pipeline_mode = #tpu.pipeline_mode<synchronous>, transform_indices = @transform_9, window_bounds = array<i64: 1, 64>}, {pipeline_mode = #tpu.pipeline_mode<synchronous>, transform_indices = @transform_10, window_bounds = array<i64: 64, 64>}, {pipeline_mode = #tpu.pipeline_mode<synchronous>, transform_indices = @transform_11, window_bounds = array<i64: 64, 64>}, {pipeline_mode = #tpu.pipeline_mode<synchronous>, transform_indices = @transform_12, window_bounds = array<i64: 1, 64>}, {transform_indices = @transform_13, window_bounds = array<i64: 1, 128, 64>}, {transform_indices = @transform_14, window_bounds = array<i64: 1, 128, 64>}]} {
    %c0 = arith.constant 0 : index
    %c0_0 = arith.constant 0 : index
    %c0_1 = arith.constant 0 : index
    %0 = vector.load %arg2[%c0, %c0_0, %c0_1] : memref<1x128x4xbf16, #tpu.memory_space<vmem>>, vector<1x128x4xbf16>
    %1 = vector.shape_cast %0 : vector<1x128x4xbf16> to vector<128x4xbf16>
    %c0_2 = arith.constant 0 : index
    %c0_3 = arith.constant 0 : index
    %c0_4 = arith.constant 0 : index
    %2 = vector.load %arg3[%c0_2, %c0_3, %c0_4] : memref<1x128x4xbf16, #tpu.memory_space<vmem>>, vector<1x128x4xbf16>
    %3 = vector.shape_cast %2 : vector<1x128x4xbf16> to vector<128x4xbf16>
    %c0_5 = arith.constant 0 : index
    %c0_6 = arith.constant 0 : index
    %c0_7 = arith.constant 0 : index
    %4 = vector.load %arg4[%c0_5, %c0_6, %c0_7] : memref<1x128x128xbf16, #tpu.memory_space<vmem>>, vector<1x128x128xbf16>
    %5 = vector.shape_cast %4 : vector<1x128x128xbf16> to vector<128x128xbf16>
    %c0_8 = arith.constant 0 : index
    %c0_9 = arith.constant 0 : index
    %6 = vector.load %arg5[%c0_8, %c0_9] : memref<4x32xbf16, #tpu.memory_space<vmem>>, vector<4x32xbf16>
    %cst = arith.constant dense<0.000000e+00> : vector<128x32xf32>
    %7 = tpu.matmul %1, %6, %cst {dimension_numbers = #tpu.dot_dimension_numbers<[1], [0], [0], [1], [0, 0, 1, 1], [], []>} : vector<128x4xbf16>, vector<4x32xbf16>, vector<128x32xf32> -> vector<128x32xf32>
    %c0_10 = arith.constant 0 : index
    %c0_11 = arith.constant 0 : index
    %8 = vector.load %arg6[%c0_10, %c0_11] : memref<1x32xf32, #tpu.memory_space<vmem>>, vector<1x32xf32>
    %9 = vector.broadcast %8 : vector<1x32xf32> to vector<128x32xf32>
    %10 = arith.addf %7, %9 : vector<128x32xf32>
    %11 = arith.truncf %10 : vector<128x32xf32> to vector<128x32xbf16>
    %c0_12 = arith.constant 0 : index
    %c0_13 = arith.constant 0 : index
    %12 = vector.load %arg5[%c0_12, %c0_13] : memref<4x32xbf16, #tpu.memory_space<vmem>>, vector<4x32xbf16>
    %cst_14 = arith.constant dense<0.000000e+00> : vector<128x32xf32>
    %13 = tpu.matmul %3, %12, %cst_14 {dimension_numbers = #tpu.dot_dimension_numbers<[1], [0], [0], [1], [0, 0, 1, 1], [], []>} : vector<128x4xbf16>, vector<4x32xbf16>, vector<128x32xf32> -> vector<128x32xf32>
    %c0_15 = arith.constant 0 : index
    %c0_16 = arith.constant 0 : index
    %14 = vector.load %arg6[%c0_15, %c0_16] : memref<1x32xf32, #tpu.memory_space<vmem>>, vector<1x32xf32>
    %15 = vector.broadcast %14 : vector<1x32xf32> to vector<128x32xf32>
    %16 = arith.addf %13, %15 : vector<128x32xf32>
    %17 = arith.truncf %16 : vector<128x32xf32> to vector<128x32xbf16>
    %cst_17 = arith.constant dense<0.000000e+00> : vector<128x32xf32>
    %18 = tpu.matmul %5, %11, %cst_17 {dimension_numbers = #tpu.dot_dimension_numbers<[1], [0], [0], [1], [0, 0, 1, 1], [], []>} : vector<128x128xbf16>, vector<128x32xbf16>, vector<128x32xf32> -> vector<128x32xf32>
    %19 = arith.truncf %18 : vector<128x32xf32> to vector<128x32xbf16>
    %c0_18 = arith.constant 0 : index
    %c0_19 = arith.constant 0 : index
    %20 = vector.load %arg7[%c0_18, %c0_19] : memref<32x32xbf16, #tpu.memory_space<vmem>>, vector<32x32xbf16>
    %cst_20 = arith.constant dense<0.000000e+00> : vector<128x32xf32>
    %21 = tpu.matmul %19, %20, %cst_20 {dimension_numbers = #tpu.dot_dimension_numbers<[1], [0], [0], [1], [0, 0, 1, 1], [], []>} : vector<128x32xbf16>, vector<32x32xbf16>, vector<128x32xf32> -> vector<128x32xf32>
    %c0_21 = arith.constant 0 : index
    %c0_22 = arith.constant 0 : index
    %22 = vector.load %arg8[%c0_21, %c0_22] : memref<32x32xbf16, #tpu.memory_space<vmem>>, vector<32x32xbf16>
    %cst_23 = arith.constant dense<0.000000e+00> : vector<128x32xf32>
    %23 = tpu.matmul %17, %22, %cst_23 {dimension_numbers = #tpu.dot_dimension_numbers<[1], [0], [0], [1], [0, 0, 1, 1], [], []>} : vector<128x32xbf16>, vector<32x32xbf16>, vector<128x32xf32> -> vector<128x32xf32>
    %24 = arith.addf %21, %23 : vector<128x32xf32>
    %c0_24 = arith.constant 0 : index
    %c0_25 = arith.constant 0 : index
    %25 = vector.load %arg9[%c0_24, %c0_25] : memref<1x32xf32, #tpu.memory_space<vmem>>, vector<1x32xf32>
    %26 = vector.broadcast %25 : vector<1x32xf32> to vector<128x32xf32>
    %27 = arith.addf %24, %26 : vector<128x32xf32>
    %cst_26 = arith.constant 0.000000e+00 : f32
    %28 = vector.broadcast %cst_26 : f32 to vector<128x32xf32>
    %29 = arith.maximumf %27, %28 : vector<128x32xf32>
    %30 = arith.truncf %29 : vector<128x32xf32> to vector<128x32xbf16>
    %c0_27 = arith.constant 0 : index
    %c0_28 = arith.constant 0 : index
    %31 = vector.load %arg10[%c0_27, %c0_28] : memref<32x64xbf16, #tpu.memory_space<vmem>>, vector<32x64xbf16>
    %cst_29 = arith.constant dense<0.000000e+00> : vector<128x64xf32>
    %32 = tpu.matmul %30, %31, %cst_29 {dimension_numbers = #tpu.dot_dimension_numbers<[1], [0], [0], [1], [0, 0, 1, 1], [], []>} : vector<128x32xbf16>, vector<32x64xbf16>, vector<128x64xf32> -> vector<128x64xf32>
    %c0_30 = arith.constant 0 : index
    %c0_31 = arith.constant 0 : index
    %33 = vector.load %arg11[%c0_30, %c0_31] : memref<1x64xf32, #tpu.memory_space<vmem>>, vector<1x64xf32>
    %34 = vector.broadcast %33 : vector<1x64xf32> to vector<128x64xf32>
    %35 = arith.addf %32, %34 : vector<128x64xf32>
    %36 = arith.truncf %35 : vector<128x64xf32> to vector<128x64xbf16>
    %c0_32 = arith.constant 0 : index
    %c0_33 = arith.constant 0 : index
    %37 = vector.load %arg12[%c0_32, %c0_33] : memref<64x64xbf16, #tpu.memory_space<vmem>>, vector<64x64xbf16>
    %cst_34 = arith.constant dense<0.000000e+00> : vector<128x64xf32>
    %38 = tpu.matmul %36, %37, %cst_34 {dimension_numbers = #tpu.dot_dimension_numbers<[1], [0], [0], [1], [0, 0, 1, 1], [], []>} : vector<128x64xbf16>, vector<64x64xbf16>, vector<128x64xf32> -> vector<128x64xf32>
    %c0_35 = arith.constant 0 : index
    %c0_36 = arith.constant 0 : index
    %c0_37 = arith.constant 0 : index
    %39 = vector.load %arg15[%c0_35, %c0_36, %c0_37] : memref<1x128x64xf32, #tpu.memory_space<vmem>>, vector<1x128x64xf32>
    %40 = vector.shape_cast %39 : vector<1x128x64xf32> to vector<128x64xf32>
    %41 = vector.shape_cast %38 : vector<128x64xf32> to vector<1x128x64xf32>
    tpu.vector_store %arg15[%c0_35, %c0_36, %c0_37], %41 {strides = array<i32>} : memref<1x128x64xf32, #tpu.memory_space<vmem>>, vector<1x128x64xf32>,
    %c0_38 = arith.constant 0 : index
    %c0_39 = arith.constant 0 : index
    %42 = vector.load %arg13[%c0_38, %c0_39] : memref<64x64xbf16, #tpu.memory_space<vmem>>, vector<64x64xbf16>
    %cst_40 = arith.constant dense<0.000000e+00> : vector<128x64xf32>
    %43 = tpu.matmul %36, %42, %cst_40 {dimension_numbers = #tpu.dot_dimension_numbers<[1], [0], [0], [1], [0, 0, 1, 1], [], []>} : vector<128x64xbf16>, vector<64x64xbf16>, vector<128x64xf32> -> vector<128x64xf32>
    %c0_41 = arith.constant 0 : index
    %c0_42 = arith.constant 0 : index
    %44 = vector.load %arg14[%c0_41, %c0_42] : memref<1x64xf32, #tpu.memory_space<vmem>>, vector<1x64xf32>
    %45 = vector.broadcast %44 : vector<1x64xf32> to vector<128x64xf32>
    %46 = arith.addf %43, %45 : vector<128x64xf32>
    %c0_43 = arith.constant 0 : index
    %c0_44 = arith.constant 0 : index
    %c0_45 = arith.constant 0 : index
    %47 = vector.load %arg16[%c0_43, %c0_44, %c0_45] : memref<1x128x64xf32, #tpu.memory_space<vmem>>, vector<1x128x64xf32>
    %48 = vector.shape_cast %47 : vector<1x128x64xf32> to vector<128x64xf32>
    %49 = vector.shape_cast %46 : vector<128x64xf32> to vector<1x128x64xf32>
    tpu.vector_store %arg16[%c0_43, %c0_44, %c0_45], %49 {strides = array<i32>} : memref<1x128x64xf32, #tpu.memory_space<vmem>>, vector<1x128x64xf32>,
    return
  }
  func.func @transform_0(%arg0: i32, %arg1: i32) -> (i32, i32, i32) {
    %c0_i32 = arith.constant 0 : i32
    %c0_i32_0 = arith.constant 0 : i32
    %c0_i32_1 = arith.constant 0 : i32
    return %arg0, %c0_i32, %c0_i32_0 : i32, i32, i32
  }
  func.func @transform_1(%arg0: i32, %arg1: i32) -> (i32, i32, i32) {
    %c0_i32 = arith.constant 0 : i32
    %c0_i32_0 = arith.constant 0 : i32
    return %arg0, %arg1, %c0_i32 : i32, i32, i32
  }
  func.func @transform_2(%arg0: i32, %arg1: i32) -> (i32, i32, i32) {
    %c0_i32 = arith.constant 0 : i32
    %c0_i32_0 = arith.constant 0 : i32
    return %arg0, %arg1, %c0_i32 : i32, i32, i32
  }
  func.func @transform_3(%arg0: i32, %arg1: i32) -> (i32, i32) {
    %c0_i32 = arith.constant 0 : i32
    %c0_i32_0 = arith.constant 0 : i32
    %c0_i32_1 = arith.constant 0 : i32
    return %c0_i32, %c0_i32_0 : i32, i32
  }
  func.func @transform_4(%arg0: i32, %arg1: i32) -> (i32, i32) {
    %c0_i32 = arith.constant 0 : i32
    %c0_i32_0 = arith.constant 0 : i32
    %c0_i32_1 = arith.constant 0 : i32
    return %c0_i32, %c0_i32_0 : i32, i32
  }
  func.func @transform_5(%arg0: i32, %arg1: i32) -> (i32, i32) {
    %c0_i32 = arith.constant 0 : i32
    %c0_i32_0 = arith.constant 0 : i32
    %c0_i32_1 = arith.constant 0 : i32
    return %c0_i32, %c0_i32_0 : i32, i32
  }
  func.func @transform_6(%arg0: i32, %arg1: i32) -> (i32, i32) {
    %c0_i32 = arith.constant 0 : i32
    %c0_i32_0 = arith.constant 0 : i32
    %c0_i32_1 = arith.constant 0 : i32
    return %c0_i32, %c0_i32_0 : i32, i32
  }
  func.func @transform_7(%arg0: i32, %arg1: i32) -> (i32, i32) {
    %c0_i32 = arith.constant 0 : i32
    %c0_i32_0 = arith.constant 0 : i32
    %c0_i32_1 = arith.constant 0 : i32
    return %c0_i32, %c0_i32_0 : i32, i32
  }
  func.func @transform_8(%arg0: i32, %arg1: i32) -> (i32, i32) {
    %c0_i32 = arith.constant 0 : i32
    %c0_i32_0 = arith.constant 0 : i32
    %c0_i32_1 = arith.constant 0 : i32
    return %c0_i32, %c0_i32_0 : i32, i32
  }
  func.func @transform_9(%arg0: i32, %arg1: i32) -> (i32, i32) {
    %c0_i32 = arith.constant 0 : i32
    %c0_i32_0 = arith.constant 0 : i32
    %c0_i32_1 = arith.constant 0 : i32
    return %c0_i32, %c0_i32_0 : i32, i32
  }
  func.func @transform_10(%arg0: i32, %arg1: i32) -> (i32, i32) {
    %c0_i32 = arith.constant 0 : i32
    %c0_i32_0 = arith.constant 0 : i32
    %c0_i32_1 = arith.constant 0 : i32
    return %c0_i32, %c0_i32_0 : i32, i32
  }
  func.func @transform_11(%arg0: i32, %arg1: i32) -> (i32, i32) {
    %c0_i32 = arith.constant 0 : i32
    %c0_i32_0 = arith.constant 0 : i32
    %c0_i32_1 = arith.constant 0 : i32
    return %c0_i32, %c0_i32_0 : i32, i32
  }
  func.func @transform_12(%arg0: i32, %arg1: i32) -> (i32, i32) {
    %c0_i32 = arith.constant 0 : i32
    %c0_i32_0 = arith.constant 0 : i32
    %c0_i32_1 = arith.constant 0 : i32
    return %c0_i32, %c0_i32_0 : i32, i32
  }
  func.func @transform_13(%arg0: i32, %arg1: i32) -> (i32, i32, i32) {
    %c0_i32 = arith.constant 0 : i32
    %c0_i32_0 = arith.constant 0 : i32
    return %arg0, %arg1, %c0_i32 : i32, i32, i32
  }
  func.func @transform_14(%arg0: i32, %arg1: i32) -> (i32, i32, i32) {
    %c0_i32 = arith.constant 0 : i32
    %c0_i32_0 = arith.constant 0 : i32
    return %arg0, %arg1, %c0_i32 : i32, i32, i32
  }
}

</mosaic_0001>

<bundles_post_ra>
// kernel: tpu_custom_call.1
= control target key start
LH: loop header
LB: loop body
LE: loop exit
PB: predicated region body
PF: predicated region fallthrough
CT: control target
= control target key end

     0   :  { %s2666_s29 = smov 0   ;;  %s2668_s30 = smov 0   ;;  %s2982_s0 = inlined_call_operand.vmem [shape: bf16[2,128,4], index: 0, kind: input, shape index: {}]   ;;  %s2983_s1 = inlined_call_operand.vmem [shape: bf16[2,128,4], index: 1, kind: input, shape index: {}]   ;;  %s2984_s2 = inlined_call_operand.vmem [shape: bf16[2,128,128], index: 2, kind: input, shape index: {}]   ;;  %s2985_s3 = inlined_call_operand.vmem [shape: bf16[4,32], index: 3, kind: input, shape index: {}]   ;;  %s2986_s4 = inlined_call_operand.vmem [shape: f32[1,32], index: 4, kind: input, shape index: {}]   ;;  %s2987_s5 = inlined_call_operand.vmem [shape: bf16[32,32], index: 5, kind: input, shape index: {}]   ;;  %s2988_s6 = inlined_call_operand.vmem [shape: bf16[32,32], index: 6, kind: input, shape index: {}]   ;;  %s2989_s7 = inlined_call_operand.vmem [shape: f32[1,32], index: 7, kind: input, shape index: {}]   ;;  %s2990_s8 = inlined_call_operand.vmem [shape: bf16[32,64], index: 8, kind: input, shape index: {}]   ;;  %s2991_s9 = inlined_call_operand.vmem [shape: f32[1,64], index: 9, kind: input, shape index: {}]   ;;  %s2992_s10 = inlined_call_operand.vmem [shape: bf16[64,64], index: 10, kind: input, shape index: {}]   ;;  %s2993_s11 = inlined_call_operand.vmem [shape: bf16[64,64], index: 11, kind: input, shape index: {}]   ;;  %s2994_s12 = inlined_call_operand.vmem [shape: f32[1,64], index: 12, kind: input, shape index: {}]   ;;  %s2995_s13 = inlined_call_operand.vmem [shape: f32[2,128,64], index: 13, kind: output, shape index: {0}]   ;;  %s2996_s14 = inlined_call_operand.vmem [shape: f32[2,128,64], index: 14, kind: output, shape index: {1}]  }
   0x1   :  { %s2670_s15 = smov 0  }
   0x2 LB: > { %s37_s16 = sadd.s32 1, %s2585_s30  ;;  %p2107_p0 = scmp.ge.s32.totalorder %s2589_s15, 1  ;;  %s2589_s15 = sphi %s2670_s15, %s25_s15   ;;  %s2585_s30 = sphi %s2668_s30, %s2998_s30   ;;  %s2581_s29 = sphi %s2666_s29, %s2997_s29  }
   0x3   : > { %p39_p1 = scmp.ge.s32.totalorder %s37_s16, 2  ;;  %p465_p2 = scmp.lt.s32.totalorder %s2589_s15, 3 }
   0x5   : > { %s3000_s16 = smov (%p39_p1, %s37_s16), 0  ;;  %p466_p3 = pnand %p2107_p0, %p465_p2 }
   0x6   : > { %v636_v0 = vld [vmem:[%s2985_s3] sm:$0x3] (!%p466_p3)  ;;  %vm709_vm0 = vcmask (!%p466_p3), 1041408   ;;  %p542_p4 = scmp.lt.s32.totalorder (!%p466_p3), %s2581_s29, 1  ;;  %vm684_vm1 = vcmask (!%p466_p3), 31744   ;;  %v2554_v20 = vld [vmem:[%s2988_s6 + $0x8] sm:$0xff] (!%p466_p3)  }
   0x7   : > { %469 = sbr.rel (%p466_p3) target bundleno = 1172 (0x494), region = 72  ;;  %2503 = vmatprep.subr.msk.bf16.mxu0 (!%p466_p3), %vm709_vm0, %v636_v0  ;;  %v711_v1 = vsel (!%p466_p3), %vm709_vm0, %v636_v0, 0  ;;  %2504 = vmatprep.subr.msk.bf16.mxu1 (!%p466_p3), %vm709_vm0, %v636_v0  ;;  %v2553_v19 = vld [vmem:[%s2988_s6] sm:$0xff] (!%p466_p3)   ;;  %vm1160_vm2 = vcmask (!%p466_p3), 261120   ;;  %vm1646_vm3 = vcmask (!%p466_p3), 523264  }
   0x8   : > { %2312 = vmatpush3.bf16.msra.mxu0 (!%p466_p3), %v711_v1  ;;  %2330 = vmatpush3.bf16.msra.mxu1 (!%p466_p3), %v711_v1  ;;  %v2732_v21 = vld [vmem:[%s2987_s5] sm:$0xff] (!%p466_p3)  }
   0x9   : > { %2379 = vmatprep.subr.bf16.mxu1 (!%p466_p3), %v2553_v19  ;;  %v2738_v23 = vld [vmem:[%s2986_s4] ss:$0 sm:$0xff] (!%p466_p3) }
   0xe   : > { %s3002_s29 = smov (!%p542_p4, %s2581_s29), 1 }
   0xf   : > { %s2690_s19 = sshll.u32 %s3002_s29, 6  ;;  %s2221_s27 = sshll.u32 %s3002_s29, 7 }
  0x10   : > { %s546_s22 = scalar_lea.vmem %s2982_s0, %s2690_s19  ;;  %s555_s25 = scalar_lea.vmem %s2983_s1, %s2690_s19 }
  0x11   : > { %v2529_v2 = vld [vmem:[%s546_s22] sm:$0xff]   ;;  %v2530_v3 = vld [vmem:[%s546_s22 + $0x8] sm:$0xff]   ;;  %v2531_v4 = vld [vmem:[%s546_s22 + $0x10] sm:$0xff]   ;;  %s2720_s28 = scalar_lea.vmem %s2984_s2, %s2690_s19  ;;  %s2881_s18 = scalar_lea.vmem %s2995_s13, %s2221_s27 }
  0x12   : > { %2313 = vmatprep.mubr.msk.bf16.mxu0 %vm684_vm1, %v2529_v2  ;;  %v2532_v5 = vld [vmem:[%s546_s22 + $0x18] sm:$0xff]   ;;  %v2533_v6 = vld [vmem:[%s546_s22 + $0x20] sm:$0xff]   ;;  %v2534_v7 = vld [vmem:[%s546_s22 + $0x28] sm:$0xff]   ;;  %s2891_s19 = scalar_lea.vmem %s2996_s14, %s2221_s27 }
  0x13   : > { %2314 = vmatmul.mubr.msk.bf16.vlgmr.msra.gmra.mrb[0].mxu0 %vm684_vm1, %v2530_v3  ;;  %v2535_v8 = vld [vmem:[%s546_s22 + $0x30] sm:$0xff]   ;;  %v2536_v9 = vld [vmem:[%s546_s22 + $0x38] sm:$0xff]   ;;  %v2537_v10 = vld [vmem:[%s555_s25] sm:$0xff]  }
  0x14   : > { %2317 = vmatprep.mubr.msk.bf16.mxu0 %vm684_vm1, %v2531_v4  ;;  %2331 = vmatprep.mubr.msk.bf16.mxu1 %vm684_vm1, %v2537_v10  ;;  %v2538_v11 = vld [vmem:[%s555_s25 + $0x8] sm:$0xff]   ;;  %v2539_v12 = vld [vmem:[%s555_s25 + $0x10] sm:$0xff]   ;;  %v2540_v13 = vld [vmem:[%s555_s25 + $0x18] sm:$0xff]  }
  0x15   : > { %2332 = vmatmul.mubr.msk.bf16.vlgmr.msra.gmra.mrb[0].mxu1 %vm684_vm1, %v2538_v11  ;;  %v2541_v14 = vld [vmem:[%s555_s25 + $0x20] sm:$0xff]   ;;  %v2542_v15 = vld [vmem:[%s555_s25 + $0x28] sm:$0xff]   ;;  %v2543_v16 = vld [vmem:[%s555_s25 + $0x30] sm:$0xff]  }
  0x16   : > { %2335 = vmatprep.mubr.msk.bf16.mxu1 %vm684_vm1, %v2539_v12  ;;  %v2544_v17 = vld [vmem:[%s555_s25 + $0x38] sm:$0xff]   ;;  %v2545_v18 = vld [vmem:[%s2720_s28] sm:$0xff]   ;;  %2380 = vmatpush3.bf16.msra.mxu1 %v2553_v19  ;;  %v2546_v63 = vld [vmem:[%s2720_s28 + $0x8] sm:$0xff]  }
  0x17   : > { %2381 = vmatprep.subr.bf16.mxu1 %v2554_v20  ;;  %v2547_v0 = vld [vmem:[%s2720_s28 + $0x10] sm:$0xff]   ;;  %v2548_v1 = vld [vmem:[%s2720_s28 + $0x18] sm:$0xff]   ;;  %v2549_v2 = vld [vmem:[%s2720_s28 + $0x20] sm:$0xff]  }
  0x18   : > { %v2550_v3 = vld [vmem:[%s2720_s28 + $0x28] sm:$0xff]   ;;  %v2551_v4 = vld [vmem:[%s2720_s28 + $0x30] sm:$0xff]  }
  0x1a   : > { %2382 = vmatpush3.bf16.msra.mxu1 %v2554_v20 }
  0x1b   : > { %2318 = vmatmul.mubr.msk.bf16.gmra.mrb[4].mxu0 %vm684_vm1, %v2532_v5  ;;  %2399 = vmatprep.subr.bf16.mxu1 %v2732_v21  ;;  %v2552_v5 = vld [vmem:[%s2720_s28 + $0x38] sm:$0xff]  }
  0x1c   : > { %2321 = vmatprep.mubr.msk.bf16.mxu0 %vm684_vm1, %v2533_v6 }
  0x1d   : > { %2336 = vmatmul.mubr.msk.bf16.gmra.mrb[4].mxu1 %vm684_vm1, %v2540_v13 }
  0x1e   : > { %2339 = vmatprep.mubr.msk.bf16.mxu1 %vm684_vm1, %v2541_v14 }
  0x23   : > { %2322 = vmatmul.mubr.msk.bf16.gmra.mrb[8].mxu0 %vm684_vm1, %v2534_v7 }
  0x24   : > { %2325 = vmatprep.mubr.msk.bf16.mxu0 %vm684_vm1, %v2535_v8 }
  0x25   : > { %2340 = vmatmul.mubr.msk.bf16.gmra.mrb[8].mxu1 %vm684_vm1, %v2542_v15 }
  0x26   : > { %2343 = vmatprep.mubr.msk.bf16.mxu1 %vm684_vm1, %v2543_v16  ;;  %v2556_v16 = vld [vmem:[%s2987_s5 + $0x8] sm:$0xff]  }
  0x2b   : > { %2326 = vmatmul.mubr.msk.bf16.gmra.mrb[12].mxu0 %vm684_vm1, %v2536_v9 }
  0x2c   : > { %2363 = vmatprep.mubr.bf16.mxu0 %v2545_v18 }
  0x2d   : > { %2344 = vmatmul.mubr.msk.bf16.gmra.mrb[12].mxu1 %vm684_vm1, %v2544_v17 }
  0xe6   : > { %v2315_v22 = vpop.f32.mrb[0].mxu0 }
  0xe7   : > { %v747_v24 = vpop.f32.mrb[1].mxu0  ;;  %v756_v26 = vadd.f32 %v2315_v22, %v2738_v23 }
  0xe8   : > { %v2316_v25 = vpop.f32.mrb[2].mxu0  ;;  %v748_v29 = vadd.f32 %v2738_v23, %v747_v24  ;;  %v2333_v6 = vpop.f32.mrb[0].mxu1 }
  0xe9   : > { %v759_v27 = vadd.f32 %v2316_v25, %v2738_v23  ;;  %v750_v28 = vpop.f32.mrb[3].mxu0  ;;  %v925_v7 = vadd.f32 %v2333_v6, %v2738_v23  ;;  %v916_v8 = vpop.f32.mrb[1].mxu1 }
  0xea   : > { %v751_v30 = vadd.f32 %v2738_v23, %v750_v28  ;;  %v917_v9 = vadd.f32 %v2738_v23, %v916_v8  ;;  %v2334_v10 = vpop.f32.mrb[2].mxu1 }
  0xeb   : > { %v811_v31 = vpack.c.bf16 %v759_v27, %v756_v26  ;;  %v928_v11 = vadd.f32 %v2334_v10, %v2738_v23  ;;  %v919_v12 = vpop.f32.mrb[3].mxu1  ;;  %v2560_v10 = vld [vmem:[%s2992_s10] sm:$0xff]  }
  0xec   : > { %v810_v32 = vpack.c.bf16 %v751_v30, %v748_v29  ;;  %v920_v13 = vadd.f32 %v2738_v23, %v919_v12  ;;  %v2563_v12 = vld [vmem:[%s2993_s11 + $0x10] sm:$0xff]  }
  0xed   : > { %v980_v14 = vpack.c.bf16 %v928_v11, %v925_v7  ;;  %v2561_v11 = vld [vmem:[%s2993_s11 + $0x8] sm:$0xff]  }
  0xee   : > { %v2319_v33 = vpop.f32.mrb[4].mxu0  ;;  %2347 = vmatprep.subr.bf16.mxu0 %v810_v32  ;;  %v979_v15 = vpack.c.bf16 %v920_v13, %v917_v9  ;;  %v2559_v9 = vld [vmem:[%s2993_s11] sm:$0xff]  }
  0xef   : > { %v763_v34 = vpop.f32.mrb[5].mxu0  ;;  %2348 = vmatpush3.bf16.msra.mxu0 %v810_v32  ;;  %v772_v36 = vadd.f32 %v2319_v33, %v2738_v23  ;;  %v2820_v13 = vld [vmem:[%s2989_s7] ss:$0 sm:$0xff] }
  0xf0   : > { %v2320_v35 = vpop.f32.mrb[6].mxu0  ;;  %2349 = vmatprep.subr.bf16.mxu0 %v811_v31  ;;  %v764_v39 = vadd.f32 %v2738_v23, %v763_v34  ;;  %v2337_v17 = vpop.f32.mrb[4].mxu1  ;;  %2383 = vmatprep.mubr.msk.bf16.mxu1 %vm1160_vm2, %v979_v15 }
  0xf1   : > { %v775_v37 = vadd.f32 %v2320_v35, %v2738_v23  ;;  %v766_v38 = vpop.f32.mrb[7].mxu0  ;;  %v941_v18 = vadd.f32 %v2337_v17, %v2738_v23  ;;  %v932_v19 = vpop.f32.mrb[5].mxu1  ;;  %2384 = vmatmul.mubr.msk.bf16.vlgmr.msra.gmra.mrb[16].mxu1 %vm1160_vm2, %v980_v14 }
  0xf2   : > { %v767_v40 = vadd.f32 %v2738_v23, %v766_v38  ;;  %v933_v20 = vadd.f32 %v2738_v23, %v932_v19  ;;  %v2338_v22 = vpop.f32.mrb[6].mxu1  ;;  %2400 = vmatpush3.bf16.msra.mxu1 %v2732_v21 }
  0xf3   : > { %v813_v41 = vpack.c.bf16 %v775_v37, %v772_v36  ;;  %2350 = vmatpush3.bf16.msra.mxu0 %v811_v31  ;;  %v944_v24 = vadd.f32 %v2338_v22, %v2738_v23  ;;  %v935_v25 = vpop.f32.mrb[7].mxu1  ;;  %2401 = vmatprep.subr.bf16.mxu1 %v2556_v16 }
  0xf4   : > { %v812_v42 = vpack.c.bf16 %v767_v40, %v764_v39  ;;  %v936_v26 = vadd.f32 %v2738_v23, %v935_v25 }
  0xf5   : > { %v982_v27 = vpack.c.bf16 %v944_v24, %v941_v18 }
  0xf6   : > { %v2323_v43 = vpop.f32.mrb[8].mxu0  ;;  %2351 = vmatprep.subr.bf16.mxu0 %v812_v42  ;;  %v981_v28 = vpack.c.bf16 %v936_v26, %v933_v20  ;;  %2402 = vmatpush3.bf16.msra.mxu1 %v2556_v16 }
  0xf7   : > { %v779_v44 = vpop.f32.mrb[9].mxu0  ;;  %2352 = vmatpush3.bf16.msra.mxu0 %v812_v42  ;;  %v788_v46 = vadd.f32 %v2323_v43, %v2738_v23  ;;  %2463 = vmatprep.subr.bf16.mxu1 %v2559_v9 }
  0xf8   : > { %v2324_v45 = vpop.f32.mrb[10].mxu0  ;;  %2353 = vmatprep.subr.bf16.mxu0 %v813_v41  ;;  %v780_v49 = vadd.f32 %v2738_v23, %v779_v44  ;;  %v2341_v29 = vpop.f32.mrb[8].mxu1  ;;  %2387 = vmatprep.mubr.msk.bf16.mxu1 %vm1160_vm2, %v981_v28 }
  0xf9   : > { %v791_v47 = vadd.f32 %v2324_v45, %v2738_v23  ;;  %v782_v48 = vpop.f32.mrb[11].mxu0  ;;  %v957_v30 = vadd.f32 %v2341_v29, %v2738_v23  ;;  %v948_v31 = vpop.f32.mrb[9].mxu1  ;;  %2388 = vmatmul.mubr.msk.bf16.gmra.mrb[20].mxu1 %vm1160_vm2, %v982_v27 }
  0xfa   : > { %v783_v50 = vadd.f32 %v2738_v23, %v782_v48  ;;  %v949_v32 = vadd.f32 %v2738_v23, %v948_v31  ;;  %v2342_v21 = vpop.f32.mrb[10].mxu1  ;;  %v2557_v48 = vld [vmem:[%s2990_s8] sm:$0xff]  }
  0xfb   : > { %v815_v51 = vpack.c.bf16 %v791_v47, %v788_v46  ;;  %2354 = vmatpush3.bf16.msra.mxu0 %v813_v41  ;;  %v960_v33 = vadd.f32 %v2342_v21, %v2738_v23  ;;  %v951_v34 = vpop.f32.mrb[11].mxu1  ;;  %v2562_v21 = vld [vmem:[%s2992_s10 + $0x8] sm:$0xff]  }
  0xfc   : > { %v814_v52 = vpack.c.bf16 %v783_v50, %v780_v49  ;;  %v952_v35 = vadd.f32 %v2738_v23, %v951_v34  ;;  %v2558_v49 = vld [vmem:[%s2990_s8 + $0x8] sm:$0xff]  }
  0xfd   : > { %v984_v36 = vpack.c.bf16 %v960_v33, %v957_v30 }
  0xfe   : > { %v2327_v53 = vpop.f32.mrb[12].mxu0  ;;  %2355 = vmatprep.subr.bf16.mxu0 %v814_v52  ;;  %v983_v37 = vpack.c.bf16 %v952_v35, %v949_v32 }
  0xff   : > { %v795_v54 = vpop.f32.mrb[13].mxu0  ;;  %2356 = vmatpush3.bf16.msra.mxu0 %v814_v52  ;;  %v804_v56 = vadd.f32 %v2327_v53, %v2738_v23 }
 0x100   : > { %v2328_v55 = vpop.f32.mrb[14].mxu0  ;;  %2357 = vmatprep.subr.bf16.mxu0 %v815_v51  ;;  %v796_v59 = vadd.f32 %v2738_v23, %v795_v54  ;;  %v2345_v38 = vpop.f32.mrb[12].mxu1  ;;  %2391 = vmatprep.mubr.msk.bf16.mxu1 %vm1160_vm2, %v983_v37 }
 0x101   : > { %v807_v57 = vadd.f32 %v2328_v55, %v2738_v23  ;;  %v798_v58 = vpop.f32.mrb[15].mxu0  ;;  %v973_v39 = vadd.f32 %v2345_v38, %v2738_v23  ;;  %v964_v40 = vpop.f32.mrb[13].mxu1  ;;  %2392 = vmatmul.mubr.msk.bf16.gmra.mrb[24].mxu1 %vm1160_vm2, %v984_v36 }
 0x102   : > { %v799_v60 = vadd.f32 %v2738_v23, %v798_v58  ;;  %v965_v41 = vadd.f32 %v2738_v23, %v964_v40  ;;  %v2346_v42 = vpop.f32.mrb[14].mxu1  ;;  %v2564_v40 = vld [vmem:[%s2992_s10 + $0x10] sm:$0xff]  }
 0x103   : > { %v817_v61 = vpack.c.bf16 %v807_v57, %v804_v56  ;;  %2358 = vmatpush3.bf16.msra.mxu0 %v815_v51  ;;  %v976_v43 = vadd.f32 %v2346_v42, %v2738_v23  ;;  %v967_v44 = vpop.f32.mrb[15].mxu1 }
 0x104   : > { %v816_v62 = vpack.c.bf16 %v799_v60, %v796_v59  ;;  %v968_v45 = vadd.f32 %v2738_v23, %v967_v44 }
 0x105   : > { %v986_v46 = vpack.c.bf16 %v976_v43, %v973_v39 }
 0x106   : > { %2359 = vmatprep.subr.bf16.mxu0 %v816_v62  ;;  %v985_v47 = vpack.c.bf16 %v968_v45, %v965_v41 }
 0x107   : > { %2360 = vmatpush3.bf16.msra.mxu0 %v816_v62 }
 0x108   : > { %2361 = vmatprep.subr.bf16.mxu0 %v817_v61  ;;  %2395 = vmatprep.mubr.msk.bf16.mxu1 %vm1160_vm2, %v985_v47 }
 0x109   : > { %2396 = vmatmul.mubr.msk.bf16.gmra.mrb[28].mxu1 %vm1160_vm2, %v986_v46 }
 0x10b   : > { %2362 = vmatpush3.bf16.msra.mxu0 %v817_v61 }
 0x10c   : > { %2419 = vmatprep.subr.bf16.mxu0 %v2557_v48 }
 0x10e   : > { %2364 = vmatmul.mubr.bf16.vlgmr.msra.gmra.mrb[16].mxu0 %v2546_v63 }
 0x10f   : > { %2367 = vmatprep.mubr.bf16.mxu0 %v2547_v0  ;;  %2420 = vmatpush3.bf16.msra.mxu0 %v2557_v48 }
 0x110   : > { %2421 = vmatprep.subr.bf16.mxu0 %v2558_v49 }
 0x113   : > { %2422 = vmatpush3.bf16.msra.mxu0 %v2558_v49 }
 0x114   : > { %2439 = vmatprep.subr.bf16.mxu0 %v2560_v10 }
 0x116   : > { %2368 = vmatmul.mubr.bf16.gmra.mrb[20].mxu0 %v2548_v1 }
 0x117   : > { %2371 = vmatprep.mubr.bf16.mxu0 %v2549_v2 }
 0x11e   : > { %2372 = vmatmul.mubr.bf16.gmra.mrb[24].mxu0 %v2550_v3 }
 0x11f   : > { %2375 = vmatprep.mubr.bf16.mxu0 %v2551_v4 }
 0x126   : > { %2376 = vmatmul.mubr.bf16.gmra.mrb[28].mxu0 %v2552_v5 }
 0x1e1   : > { %v2365_v50 = vpop.f32.mrb[16].mxu0 }
 0x1e2   : > { %v1069_v23 = vpop.f32.mrb[17].mxu0 }
 0x1e3   : > { %v2366_v51 = vpop.f32.mrb[18].mxu0 }
 0x1e4   : > { %v1133_v52 = vpack.c.bf16 %v2366_v51, %v2365_v50  ;;  %v1072_v53 = vpop.f32.mrb[19].mxu0 }
 0x1e5   : > { %v1132_v54 = vpack.c.bf16 %v1072_v53, %v1069_v23 }
 0x1e7   : > { %2403 = vmatprep.mubr.msk.bf16.mxu1 %vm1160_vm2, %v1132_v54 }
 0x1e8   : > { %2404 = vmatmul.mubr.msk.bf16.vlgmr.msra.gmra.mrb[16].mxu1 %vm1160_vm2, %v1133_v52 }
 0x1e9   : > { %v2369_v55 = vpop.f32.mrb[20].mxu0  ;;  %2464 = vmatpush3.bf16.msra.mxu1 %v2559_v9  ;;  %v2566_v9 = vld [vmem:[%s2992_s10 + $0x18] sm:$0xff]  }
 0x1ea   : > { %v1085_v56 = vpop.f32.mrb[21].mxu0  ;;  %2465 = vmatprep.subr.bf16.mxu1 %v2561_v11 }
 0x1eb   : > { %v2370_v57 = vpop.f32.mrb[22].mxu0 }
 0x1ec   : > { %v1135_v58 = vpack.c.bf16 %v2370_v57, %v2369_v55  ;;  %v1088_v59 = vpop.f32.mrb[23].mxu0 }
 0x1ed   : > { %v1134_v60 = vpack.c.bf16 %v1088_v59, %v1085_v56  ;;  %2466 = vmatpush3.bf16.msra.mxu1 %v2561_v11  ;;  %v2180_v11 = vld [vmem:[%s2991_s9] ss:$0 sm:$0xff] }
 0x1ee   : > { %2467 = vmatprep.subr.bf16.mxu1 %v2563_v12 }
 0x1ef   : > { %2407 = vmatprep.mubr.msk.bf16.mxu1 %vm1160_vm2, %v1134_v60 }
 0x1f0   : > { %2408 = vmatmul.mubr.msk.bf16.gmra.mrb[20].mxu1 %vm1160_vm2, %v1135_v58 }
 0x1f1   : > { %v2373_v61 = vpop.f32.mrb[24].mxu0  ;;  %2468 = vmatpush3.bf16.msra.mxu1 %v2563_v12 }
 0x1f2   : > { %v1101_v62 = vpop.f32.mrb[25].mxu0 }
 0x1f3   : > { %v2374_v63 = vpop.f32.mrb[26].mxu0 }
 0x1f4   : > { %v1137_v0 = vpack.c.bf16 %v2374_v63, %v2373_v61  ;;  %v1104_v1 = vpop.f32.mrb[27].mxu0 }
 0x1f5   : > { %v1136_v2 = vpack.c.bf16 %v1104_v1, %v1101_v62 }
 0x1f7   : > { %2411 = vmatprep.mubr.msk.bf16.mxu1 %vm1160_vm2, %v1136_v2 }
 0x1f8   : > { %2412 = vmatmul.mubr.msk.bf16.gmra.mrb[24].mxu1 %vm1160_vm2, %v1137_v0 }
 0x1f9   : > { %v2377_v3 = vpop.f32.mrb[28].mxu0 }
 0x1fa   : > { %v1117_v4 = vpop.f32.mrb[29].mxu0 }
 0x1fb   : > { %v2378_v5 = vpop.f32.mrb[30].mxu0 }
 0x1fc   : > { %v1139_v6 = vpack.c.bf16 %v2378_v5, %v2377_v3  ;;  %v1120_v7 = vpop.f32.mrb[31].mxu0 }
 0x1fd   : > { %v1138_v8 = vpack.c.bf16 %v1120_v7, %v1117_v4 }
 0x1ff   : > { %2415 = vmatprep.mubr.msk.bf16.mxu1 %vm1160_vm2, %v1138_v8  ;;  %v2565_v8 = vld [vmem:[%s2993_s11 + $0x18] sm:$0xff]  }
 0x200   : > { %2416 = vmatmul.mubr.msk.bf16.gmra.mrb[28].mxu1 %vm1160_vm2, %v1139_v6  ;;  %2469 = vmatprep.subr.bf16.mxu1 %v2565_v8 }
 0x201   : > { %2470 = vmatpush3.bf16.msra.mxu1 %v2565_v8 }
 0x2bb   : > { %v2405_v14 = vpop.f32.mrb[16].mxu1 }
 0x2bc   : > { %v1424_v15 = vadd.f32 %v2405_v14, %v2820_v13  ;;  %v1352_v16 = vpop.f32.mrb[17].mxu1 }
 0x2bd   : > { %v1422_v17 = vadd.f32 %v2820_v13, %v1352_v16  ;;  %v2406_v18 = vpop.f32.mrb[18].mxu1 }
 0x2be   : > { %v1425_v19 = vadd.f32 %v2406_v18, %v2820_v13  ;;  %v1355_v20 = vpop.f32.mrb[19].mxu1  ;;  %v1440_v24 = vmax.f32 %v1424_v15, 0.0 }
 0x2bf   : > { %v1423_v22 = vadd.f32 %v2820_v13, %v1355_v20  ;;  %v1438_v26 = vmax.f32 %v1422_v17, 0.0 }
 0x2c0   : > { %v1441_v25 = vmax.f32 %v1425_v19, 0.0 }
 0x2c1   : > { %v1439_v27 = vmax.f32 %v1423_v22, 0.0 }
 0x2c2   : > { %v1455_v28 = vpack.c.bf16 %v1441_v25, %v1440_v24 }
 0x2c3   : > { %v1454_v29 = vpack.c.bf16 %v1439_v27, %v1438_v26  ;;  %v2409_v30 = vpop.f32.mrb[20].mxu1 }
 0x2c4   : > { %v1428_v31 = vadd.f32 %v2409_v30, %v2820_v13  ;;  %v1368_v32 = vpop.f32.mrb[21].mxu1 }
 0x2c5   : > { %v1426_v33 = vadd.f32 %v2820_v13, %v1368_v32  ;;  %v2410_v34 = vpop.f32.mrb[22].mxu1  ;;  %2423 = vmatprep.mubr.msk.bf16.mxu0 %vm1160_vm2, %v1454_v29 }
 0x2c6   : > { %v1429_v35 = vadd.f32 %v2410_v34, %v2820_v13  ;;  %v1371_v36 = vpop.f32.mrb[23].mxu1  ;;  %2424 = vmatmul.mubr.msk.bf16.vlgmr.msra.gmra.mrb[32].mxu0 %vm1160_vm2, %v1455_v28  ;;  %v1444_v38 = vmax.f32 %v1428_v31, 0.0 }
 0x2c7   : > { %v1427_v37 = vadd.f32 %v2820_v13, %v1371_v36  ;;  %2440 = vmatpush3.bf16.msra.mxu0 %v2560_v10  ;;  %v1442_v41 = vmax.f32 %v1426_v33, 0.0 }
 0x2c8   : > { %v1445_v39 = vmax.f32 %v1429_v35, 0.0  ;;  %2441 = vmatprep.subr.bf16.mxu0 %v2562_v21 }
 0x2c9   : > { %v1443_v42 = vmax.f32 %v1427_v37, 0.0 }
 0x2ca   : > { %v1457_v43 = vpack.c.bf16 %v1445_v39, %v1444_v38 }
 0x2cb   : > { %v1456_v44 = vpack.c.bf16 %v1443_v42, %v1442_v41  ;;  %v2413_v45 = vpop.f32.mrb[24].mxu1  ;;  %2442 = vmatpush3.bf16.msra.mxu0 %v2562_v21 }
 0x2cc   : > { %v1432_v46 = vadd.f32 %v2413_v45, %v2820_v13  ;;  %v1384_v47 = vpop.f32.mrb[25].mxu1  ;;  %2443 = vmatprep.subr.bf16.mxu0 %v2564_v40 }
 0x2cd   : > { %v1430_v48 = vadd.f32 %v2820_v13, %v1384_v47  ;;  %v2414_v49 = vpop.f32.mrb[26].mxu1  ;;  %2427 = vmatprep.mubr.msk.bf16.mxu0 %vm1160_vm2, %v1456_v44 }
 0x2ce   : > { %v1433_v50 = vadd.f32 %v2414_v49, %v2820_v13  ;;  %v1387_v23 = vpop.f32.mrb[27].mxu1  ;;  %2428 = vmatmul.mubr.msk.bf16.gmra.mrb[36].mxu0 %vm1160_vm2, %v1457_v43  ;;  %v1448_v52 = vmax.f32 %v1432_v46, 0.0 }
 0x2cf   : > { %v1431_v51 = vadd.f32 %v2820_v13, %v1387_v23  ;;  %2444 = vmatpush3.bf16.msra.mxu0 %v2564_v40  ;;  %v1446_v54 = vmax.f32 %v1430_v48, 0.0 }
 0x2d0   : > { %v1449_v53 = vmax.f32 %v1433_v50, 0.0  ;;  %2445 = vmatprep.subr.bf16.mxu0 %v2566_v9 }
 0x2d1   : > { %v1447_v55 = vmax.f32 %v1431_v51, 0.0  ;;  %v2886_v51 = vld [vmem:[%s2994_s12] ss:$0 sm:$0xff] }
 0x2d2   : > { %v1459_v56 = vpack.c.bf16 %v1449_v53, %v1448_v52 }
 0x2d3   : > { %v1458_v57 = vpack.c.bf16 %v1447_v55, %v1446_v54  ;;  %v2417_v58 = vpop.f32.mrb[28].mxu1  ;;  %2446 = vmatpush3.bf16.msra.mxu0 %v2566_v9 }
 0x2d4   : > { %v1436_v59 = vadd.f32 %v2417_v58, %v2820_v13  ;;  %v1400_v60 = vpop.f32.mrb[29].mxu1 }
 0x2d5   : > { %v1434_v61 = vadd.f32 %v2820_v13, %v1400_v60  ;;  %v2418_v62 = vpop.f32.mrb[30].mxu1  ;;  %2431 = vmatprep.mubr.msk.bf16.mxu0 %vm1160_vm2, %v1458_v57 }
 0x2d6   : > { %v1437_v63 = vadd.f32 %v2418_v62, %v2820_v13  ;;  %v1403_v0 = vpop.f32.mrb[31].mxu1  ;;  %2432 = vmatmul.mubr.msk.bf16.gmra.mrb[40].mxu0 %vm1160_vm2, %v1459_v56  ;;  %v1452_v2 = vmax.f32 %v1436_v59, 0.0 }
 0x2d7   : > { %v1435_v1 = vadd.f32 %v2820_v13, %v1403_v0  ;;  %v1450_v4 = vmax.f32 %v1434_v61, 0.0 }
 0x2d8   : > { %v1453_v3 = vmax.f32 %v1437_v63, 0.0 }
 0x2d9   : > { %v1451_v5 = vmax.f32 %v1435_v1, 0.0 }
 0x2da   : > { %v1461_v6 = vpack.c.bf16 %v1453_v3, %v1452_v2 }
 0x2db   : > { %v1460_v7 = vpack.c.bf16 %v1451_v5, %v1450_v4 }
 0x2dd   : > { %2435 = vmatprep.mubr.msk.bf16.mxu0 %vm1160_vm2, %v1460_v7 }
 0x2de   : > { %2436 = vmatmul.mubr.msk.bf16.gmra.mrb[44].mxu0 %vm1160_vm2, %v1461_v6 }
 0x399   : > { %v2425_v10 = vpop.f32.mrb[32].mxu0 }
 0x39a   : > { %v1543_v12 = vpop.f32.mrb[33].mxu0  ;;  %v1552_v14 = vadd.f32 %v2425_v10, %v2180_v11 }
 0x39b   : > { %v2426_v13 = vpop.f32.mrb[34].mxu0  ;;  %v1544_v17 = vadd.f32 %v2180_v11, %v1543_v12 }
 0x39c   : > { %v1555_v15 = vadd.f32 %v2426_v13, %v2180_v11  ;;  %v1546_v16 = vpop.f32.mrb[35].mxu0 }
 0x39d   : > { %v1547_v18 = vadd.f32 %v2180_v11, %v1546_v16 }
 0x39e   : > { %v1607_v19 = vpack.c.bf16 %v1555_v15, %v1552_v14 }
 0x39f   : > { %v1606_v20 = vpack.c.bf16 %v1547_v18, %v1544_v17 }
 0x3a1   : > { %v2429_v22 = vpop.f32.mrb[36].mxu0  ;;  %2447 = vmatprep.mubr.msk.bf16.mxu0 %vm1646_vm3, %v1606_v20  ;;  %2471 = vmatprep.mubr.msk.bf16.mxu1 %vm1646_vm3, %v1606_v20 }
 0x3a2   : > { %v1559_v24 = vpop.f32.mrb[37].mxu0  ;;  %2448 = vmatmul.mubr.msk.bf16.vlgmr.msra.gmra.mrb[48].mxu0 %vm1646_vm3, %v1607_v19  ;;  %2472 = vmatmul.mubr.msk.bf16.vlgmr.msra.gmra.mrb[32].mxu1 %vm1646_vm3, %v1607_v19  ;;  %v1568_v26 = vadd.f32 %v2429_v22, %v2180_v11 }
 0x3a3   : > { %v2430_v25 = vpop.f32.mrb[38].mxu0  ;;  %v1560_v29 = vadd.f32 %v2180_v11, %v1559_v24 }
 0x3a4   : > { %v1571_v27 = vadd.f32 %v2430_v25, %v2180_v11  ;;  %v1562_v28 = vpop.f32.mrb[39].mxu0 }
 0x3a5   : > { %v1563_v30 = vadd.f32 %v2180_v11, %v1562_v28 }
 0x3a6   : > { %v1609_v31 = vpack.c.bf16 %v1571_v27, %v1568_v26 }
 0x3a7   : > { %v1608_v32 = vpack.c.bf16 %v1563_v30, %v1560_v29 }
 0x3a9   : > { %v2433_v21 = vpop.f32.mrb[40].mxu0  ;;  %2451 = vmatprep.mubr.msk.bf16.mxu0 %vm1646_vm3, %v1608_v32  ;;  %2475 = vmatprep.mubr.msk.bf16.mxu1 %vm1646_vm3, %v1608_v32 }
 0x3aa   : > { %v1575_v33 = vpop.f32.mrb[41].mxu0  ;;  %2452 = vmatmul.mubr.msk.bf16.gmra.mrb[52].mxu0 %vm1646_vm3, %v1609_v31  ;;  %2476 = vmatmul.mubr.msk.bf16.gmra.mrb[36].mxu1 %vm1646_vm3, %v1609_v31  ;;  %v1584_v35 = vadd.f32 %v2433_v21, %v2180_v11 }
 0x3ab   : > { %v2434_v34 = vpop.f32.mrb[42].mxu0  ;;  %v1576_v38 = vadd.f32 %v2180_v11, %v1575_v33 }
 0x3ac   : > { %v1587_v36 = vadd.f32 %v2434_v34, %v2180_v11  ;;  %v1578_v37 = vpop.f32.mrb[43].mxu0 }
 0x3ad   : > { %v1579_v39 = vadd.f32 %v2180_v11, %v1578_v37 }
 0x3ae   : > { %v1611_v40 = vpack.c.bf16 %v1587_v36, %v1584_v35 }
 0x3af   : > { %v1610_v41 = vpack.c.bf16 %v1579_v39, %v1576_v38 }
 0x3b1   : > { %v2437_v42 = vpop.f32.mrb[44].mxu0  ;;  %2455 = vmatprep.mubr.msk.bf16.mxu0 %vm1646_vm3, %v1610_v41  ;;  %2479 = vmatprep.mubr.msk.bf16.mxu1 %vm1646_vm3, %v1610_v41 }
 0x3b2   : > { %v1591_v43 = vpop.f32.mrb[45].mxu0  ;;  %2456 = vmatmul.mubr.msk.bf16.gmra.mrb[56].mxu0 %vm1646_vm3, %v1611_v40  ;;  %2480 = vmatmul.mubr.msk.bf16.gmra.mrb[40].mxu1 %vm1646_vm3, %v1611_v40  ;;  %v1600_v45 = vadd.f32 %v2437_v42, %v2180_v11 }
 0x3b3   : > { %v2438_v44 = vpop.f32.mrb[46].mxu0  ;;  %v1592_v48 = vadd.f32 %v2180_v11, %v1591_v43 }
 0x3b4   : > { %v1603_v46 = vadd.f32 %v2438_v44, %v2180_v11  ;;  %v1594_v47 = vpop.f32.mrb[47].mxu0 }
 0x3b5   : > { %v1595_v49 = vadd.f32 %v2180_v11, %v1594_v47 }
 0x3b6   : > { %v1613_v50 = vpack.c.bf16 %v1603_v46, %v1600_v45 }
 0x3b7   : > { %v1612_v23 = vpack.c.bf16 %v1595_v49, %v1592_v48 }
 0x3b9   : > { %2459 = vmatprep.mubr.msk.bf16.mxu0 %vm1646_vm3, %v1612_v23  ;;  %2483 = vmatprep.mubr.msk.bf16.mxu1 %vm1646_vm3, %v1612_v23 }
 0x3ba   : > { %2460 = vmatmul.mubr.msk.bf16.gmra.mrb[60].mxu0 %vm1646_vm3, %v1613_v50  ;;  %2484 = vmatmul.mubr.msk.bf16.gmra.mrb[44].mxu1 %vm1646_vm3, %v1613_v50 }
 0x475   : > { %v2449_v52 = vpop.f32.mrb[48].mxu0  ;;  %v2473_v53 = vpop.f32.mrb[32].mxu1 }
 0x476   : > { %1770 = vst.msk [vmem:[%s2881_s18 + $0x10] sm:$0xff] %vm1646_vm3, %v2449_v52  ;;  %v1866_v54 = vadd.f32 %v2473_v53, %v2886_v51  ;;  %v1705_v55 = vpop.f32.mrb[49].mxu0  ;;  %v1857_v56 = vpop.f32.mrb[33].mxu1 }
 0x477   : > { %1768 = vst.msk [vmem:[%s2881_s18] sm:$0xff] %vm1646_vm3, %v1705_v55  ;;  %v1858_v57 = vadd.f32 %v2886_v51, %v1857_v56  ;;  %v2450_v58 = vpop.f32.mrb[50].mxu0  ;;  %v2474_v59 = vpop.f32.mrb[34].mxu1 }
 0x478   : > { %1922 = vst.msk [vmem:[%s2891_s19 + $0x10] sm:$0xff] %vm1646_vm3, %v1866_v54  ;;  %1771 = vst.msk [vmem:[%s2881_s18 + $0x18] sm:$0xff] %vm1646_vm3, %v2450_v58  ;;  %v1869_v60 = vadd.f32 %v2474_v59, %v2886_v51  ;;  %v1708_v61 = vpop.f32.mrb[51].mxu0  ;;  %v1860_v62 = vpop.f32.mrb[35].mxu1 }
 0x479   : > { %1920 = vst.msk [vmem:[%s2891_s19] sm:$0xff] %vm1646_vm3, %v1858_v57  ;;  %1769 = vst.msk [vmem:[%s2881_s18 + $0x8] sm:$0xff] %vm1646_vm3, %v1708_v61  ;;  %v1861_v63 = vadd.f32 %v2886_v51, %v1860_v62 }
 0x47a   : > { %1923 = vst.msk [vmem:[%s2891_s19 + $0x18] sm:$0xff] %vm1646_vm3, %v1869_v60 }
 0x47b   : > { %1921 = vst.msk [vmem:[%s2891_s19 + $0x8] sm:$0xff] %vm1646_vm3, %v1861_v63 }
 0x47d   : > { %v2453_v0 = vpop.f32.mrb[52].mxu0  ;;  %v2477_v1 = vpop.f32.mrb[36].mxu1 }
 0x47e   : > { %1774 = vst.msk [vmem:[%s2881_s18 + $0x30] sm:$0xff] %vm1646_vm3, %v2453_v0  ;;  %v1882_v2 = vadd.f32 %v2477_v1, %v2886_v51  ;;  %v1721_v3 = vpop.f32.mrb[53].mxu0  ;;  %v1873_v4 = vpop.f32.mrb[37].mxu1 }
 0x47f   : > { %1772 = vst.msk [vmem:[%s2881_s18 + $0x20] sm:$0xff] %vm1646_vm3, %v1721_v3  ;;  %v1874_v5 = vadd.f32 %v2886_v51, %v1873_v4  ;;  %v2454_v6 = vpop.f32.mrb[54].mxu0  ;;  %v2478_v7 = vpop.f32.mrb[38].mxu1 }
 0x480   : > { %1926 = vst.msk [vmem:[%s2891_s19 + $0x30] sm:$0xff] %vm1646_vm3, %v1882_v2  ;;  %1775 = vst.msk [vmem:[%s2881_s18 + $0x38] sm:$0xff] %vm1646_vm3, %v2454_v6  ;;  %v1885_v8 = vadd.f32 %v2478_v7, %v2886_v51  ;;  %v1724_v9 = vpop.f32.mrb[55].mxu0  ;;  %v1876_v10 = vpop.f32.mrb[39].mxu1 }
 0x481   : > { %1924 = vst.msk [vmem:[%s2891_s19 + $0x20] sm:$0xff] %vm1646_vm3, %v1874_v5  ;;  %1773 = vst.msk [vmem:[%s2881_s18 + $0x28] sm:$0xff] %vm1646_vm3, %v1724_v9  ;;  %v1877_v11 = vadd.f32 %v2886_v51, %v1876_v10 }
 0x482   : > { %1927 = vst.msk [vmem:[%s2891_s19 + $0x38] sm:$0xff] %vm1646_vm3, %v1885_v8 }
 0x483   : > { %1925 = vst.msk [vmem:[%s2891_s19 + $0x28] sm:$0xff] %vm1646_vm3, %v1877_v11 }
 0x485   : > { %v2457_v12 = vpop.f32.mrb[56].mxu0  ;;  %v2481_v13 = vpop.f32.mrb[40].mxu1 }
 0x486   : > { %1778 = vst.msk [vmem:[%s2881_s18 + $0x50] sm:$0xff] %vm1646_vm3, %v2457_v12  ;;  %v1898_v14 = vadd.f32 %v2481_v13, %v2886_v51  ;;  %v1737_v15 = vpop.f32.mrb[57].mxu0  ;;  %v1889_v16 = vpop.f32.mrb[41].mxu1 }
 0x487   : > { %1776 = vst.msk [vmem:[%s2881_s18 + $0x40] sm:$0xff] %vm1646_vm3, %v1737_v15  ;;  %v1890_v17 = vadd.f32 %v2886_v51, %v1889_v16  ;;  %v2458_v18 = vpop.f32.mrb[58].mxu0  ;;  %v2482_v19 = vpop.f32.mrb[42].mxu1 }
 0x488   : > { %1930 = vst.msk [vmem:[%s2891_s19 + $0x50] sm:$0xff] %vm1646_vm3, %v1898_v14  ;;  %1779 = vst.msk [vmem:[%s2881_s18 + $0x58] sm:$0xff] %vm1646_vm3, %v2458_v18  ;;  %v1901_v20 = vadd.f32 %v2482_v19, %v2886_v51  ;;  %v1740_v22 = vpop.f32.mrb[59].mxu0  ;;  %v1892_v24 = vpop.f32.mrb[43].mxu1 }
 0x489   : > { %1928 = vst.msk [vmem:[%s2891_s19 + $0x40] sm:$0xff] %vm1646_vm3, %v1890_v17  ;;  %1777 = vst.msk [vmem:[%s2881_s18 + $0x48] sm:$0xff] %vm1646_vm3, %v1740_v22  ;;  %v1893_v25 = vadd.f32 %v2886_v51, %v1892_v24 }
 0x48a   : > { %1931 = vst.msk [vmem:[%s2891_s19 + $0x58] sm:$0xff] %vm1646_vm3, %v1901_v20 }
 0x48b   : > { %1929 = vst.msk [vmem:[%s2891_s19 + $0x48] sm:$0xff] %vm1646_vm3, %v1893_v25 }
 0x48d   : > { %v2461_v26 = vpop.f32.mrb[60].mxu0  ;;  %v2485_v27 = vpop.f32.mrb[44].mxu1 }
 0x48e   : > { %1782 = vst.msk [vmem:[%s2881_s18 + $0x70] sm:$0xff] %vm1646_vm3, %v2461_v26  ;;  %v1914_v28 = vadd.f32 %v2485_v27, %v2886_v51  ;;  %v1753_v29 = vpop.f32.mrb[61].mxu0  ;;  %v1905_v30 = vpop.f32.mrb[45].mxu1 }
 0x48f   : > { %1780 = vst.msk [vmem:[%s2881_s18 + $0x60] sm:$0xff] %vm1646_vm3, %v1753_v29  ;;  %v1906_v31 = vadd.f32 %v2886_v51, %v1905_v30  ;;  %v2462_v32 = vpop.f32.mrb[62].mxu0  ;;  %v2486_v21 = vpop.f32.mrb[46].mxu1 }
 0x490   : > { %1934 = vst.msk [vmem:[%s2891_s19 + $0x70] sm:$0xff] %vm1646_vm3, %v1914_v28  ;;  %1783 = vst.msk [vmem:[%s2881_s18 + $0x78] sm:$0xff] %vm1646_vm3, %v2462_v32  ;;  %v1917_v33 = vadd.f32 %v2486_v21, %v2886_v51  ;;  %v1756_v34 = vpop.f32.mrb[63].mxu0  ;;  %v1908_v35 = vpop.f32.mrb[47].mxu1 }
 0x491   : > { %1932 = vst.msk [vmem:[%s2891_s19 + $0x60] sm:$0xff] %vm1646_vm3, %v1906_v31  ;;  %1781 = vst.msk [vmem:[%s2881_s18 + $0x68] sm:$0xff] %vm1646_vm3, %v1756_v34  ;;  %v1909_v36 = vadd.f32 %v2886_v51, %v1908_v35 }
 0x492   : > { %1935 = vst.msk [vmem:[%s2891_s19 + $0x78] sm:$0xff] %vm1646_vm3, %v1917_v33 }
 0x493   : > { %1933 = vst.msk [vmem:[%s2891_s19 + $0x68] sm:$0xff] %vm1646_vm3, %v1909_v36 }
 0x494 PF: > { %s25_s15 = sadd.s32 1, %s2589_s15   ;;  %s2997_s29 = smov %s2585_s30 }
 0x495   : > { %p22_p5 = scmp.ge.s32.totalorder %s25_s15, 4   ;;  %s2998_s30 = smov %s3000_s16 }
 0x497   :  { %24 = sbr.rel (!%p22_p5) target bundleno = 2 (0x2), region = 120 }

</bundles_post_ra>
